<compile_context>
chip_gen: v5e
topology: v5e:2x2
jax: 0.10.0
libtpu: 0.0.40
codegen_flags: <defaults>
</compile_context>

<pallas_src>
import functools

import jax
import jax.numpy as jnp
from jax.experimental import pallas as pl
from jax.experimental.pallas import tpu as pltpu

_LANE = 128


# ----------------------------- Pallas kernels ------------------------------

def _gap_chunked_kernel(x_ref, o_ref, acc_ref, *, nchunks, inv_hw):
    """Accumulating global-average-pool kernel.

    x_ref:   (tm, tk) input tile, tk = nchunks * 128.
    o_ref:   (tm, 1) output tile (resident across the k grid axis).
    acc_ref: (tm, 128) f32 scratch, persists across the "arbitrary" k axis.
    """
    k = pl.program_id(1)

    @pl.when(k == 0)
    def _init():
        acc_ref[...] = jnp.zeros_like(acc_ref)

    x = x_ref[...].astype(jnp.float32)            # (tm, tk)
    # Lane-aligned VPU adds only; no cross-lane (XLU) work inside the k loop.
    s = x[:, 0:_LANE]
    for j in range(1, nchunks):
        s = s + x[:, j * _LANE:(j + 1) * _LANE]
    acc_ref[...] += s

    @pl.when(k == pl.num_programs(1) - 1)
    def _finalize():
        # One cross-lane reduce + one scale per row tile, hoisted out of the loop.
        total = jnp.sum(acc_ref[...], axis=-1, keepdims=True)
        o_ref[...] = (total * inv_hw).astype(o_ref.dtype)


def _gap_simple_kernel(x_ref, o_ref, *, inv_hw):
    """Fallback: K (=H*W) is not a multiple of 128 -> reduce the full row at once."""
    total = jnp.sum(x_ref[...].astype(jnp.float32), axis=-1, keepdims=True)
    o_ref[...] = (total * inv_hw).astype(o_ref.dtype)


# ------------------------------- wrappers -----------------------------------

def _pick_tile(dim, align, max_tile):
    """Largest divisor of `dim` that is a multiple of `align` and <= max_tile.
    Falls back to the full dim (always a legal block) when dim % align != 0."""
    if dim % align != 0 or dim <= align:
        return dim
    t = min(max_tile, dim)
    t -= t % align
    while dim % t != 0:
        t -= align
    return max(t, align)


def pallas_global_avg_pool_rows(x2d):
    """Row-wise mean: x2d [M, K] -> [M, 1]; accumulation in f32."""
    M, K = x2d.shape
    inv_hw = 1.0 / float(K)
    out_shape = jax.ShapeDtypeStruct((M, 1), x2d.dtype)

    # Tile sizing: worst case f32 input block 256*2048*4 B = 2 MiB; double
    # buffered ~4 MiB -> fits the scoped-VMEM default on v5e/v6e/v7x.
    tm = _pick_tile(M, 8, 256)
    grid_m = M // tm

    if K % _LANE == 0:
        tk = _pick_tile(K, _LANE, 2048)
        grid_k = K // tk
        kernel = functools.partial(
            _gap_chunked_kernel, nchunks=tk // _LANE, inv_hw=inv_hw)
        return pl.pallas_call(
            kernel,
            out_shape=out_shape,
            grid=(grid_m, grid_k),
            in_specs=[pl.BlockSpec((tm, tk), lambda i, k: (i, k))],
            out_specs=pl.BlockSpec((tm, 1), lambda i, k: (i, 0)),
            scratch_shapes=[pltpu.VMEM((tm, _LANE), jnp.float32)],
            compiler_params=pltpu.CompilerParams(
                dimension_semantics=("parallel", "arbitrary")),
        )(x2d)

    kernel = functools.partial(_gap_simple_kernel, inv_hw=inv_hw)
    return pl.pallas_call(
        kernel,
        out_shape=out_shape,
        grid=(grid_m,),
        in_specs=[pl.BlockSpec((tm, K), lambda i: (i, 0))],
        out_specs=pl.BlockSpec((tm, 1), lambda i: (i, 0)),
        compiler_params=pltpu.CompilerParams(
            dimension_semantics=("parallel",)),
    )(x2d)


def global_pool_forward(x, pool_type="mean", keep_dim=False):
    """Functional equivalent of GlobalPool.forward (mean pool over H, W)."""
    assert x.ndim == 4, "Got: {}".format(x.shape)
    # The PyTorch module only ever computes a mean pool in _global_pool.
    assert pool_type == "mean", "GlobalPool only implements mean pooling"
    B, C, H, W = x.shape
    x2d = x.reshape(B * C, H * W)              # contiguous collapse: free glue
    y = pallas_global_avg_pool_rows(x2d)       # [B*C, 1]
    if keep_dim:
        return y.reshape(B, C, 1, 1)
    return y.reshape(B, C)


# --------------------------------- main --------------------------------------

if __name__ == "__main__":
    key = jax.random.PRNGKey(0)
    k1, k2, k3 = jax.random.split(key, 3)

    # Primary case (spec-consistent small shape): batch=2, channels=4, 16x16.
    x = jax.random.normal(k1, (2, 4, 16, 16), dtype=jnp.float32)
    y = global_pool_forward(x, keep_dim=False)
    y_kd = global_pool_forward(x, keep_dim=True)
    jax.block_until_ready((y, y_kd))

    ref = jnp.mean(x, axis=(-2, -1))
    assert y.shape == (2, 4)
    assert y_kd.shape == (2, 4, 1, 1)
    assert jnp.allclose(y, ref, atol=1e-5, rtol=1e-5), "mean-pool mismatch"
    assert jnp.allclose(y_kd.reshape(2, 4), ref, atol=1e-5, rtol=1e-5)

    # Case exercising the multi-step K accumulator (H*W = 4096 -> 2 k-steps).
    x2 = jax.random.normal(k2, (2, 8, 64, 64), dtype=jnp.float32)
    y2 = global_pool_forward(x2)
    jax.block_until_ready(y2)
    assert jnp.allclose(y2, jnp.mean(x2, axis=(-2, -1)), atol=1e-5, rtol=1e-5)

    # Case exercising the non-multiple-of-128 fallback (7x7 pool, K=49).
    x3 = jax.random.normal(k3, (2, 4, 7, 7), dtype=jnp.float32)
    y3 = global_pool_forward(x3)
    jax.block_until_ready(y3)
    assert jnp.allclose(y3, jnp.mean(x3, axis=(-2, -1)), atol=1e-5, rtol=1e-5)

    print("KERNEL_OK")
</pallas_src>

<mosaic_0001>
module attributes {stable_mosaic.version = 11 : i64} {
  func.func @_gap_chunked_kernel(%arg0: i32, %arg1: i32, %arg2: memref<8x256xf32, #tpu.memory_space<vmem>>, %arg3: memref<8x1xf32, #tpu.memory_space<vmem>>, %arg4: memref<8x128xf32, #tpu.memory_space<vmem>>) attributes {dimension_semantics = [#tpu.dimension_semantics<parallel>, #tpu.dimension_semantics<arbitrary>], iteration_bounds = array<i64: 1, 1>, scalar_prefetch = 0 : i64, scratch_operands = 1 : i64, tpu.core_type = #tpu.core_type<tc>, window_params = [{transform_indices = @transform_0, window_bounds = array<i64: 8, 256>}, {transform_indices = @transform_1, window_bounds = array<i64: 8, 1>}]} {
    %c0_i32 = arith.constant 0 : i32
    %0 = arith.cmpi eq, %arg1, %c0_i32 : i32
    %1 = arith.extui %0 : i1 to i32
    %c0_i32_0 = arith.constant 0 : i32
    %2 = arith.cmpi ne, %1, %c0_i32_0 : i32
    scf.if %2 {
      %cst = arith.constant 0.000000e+00 : f32
      %13 = vector.broadcast %cst : f32 to vector<8x128xf32>
      %c0_8 = arith.constant 0 : index
      %c0_9 = arith.constant 0 : index
      %14 = vector.load %arg4[%c0_8, %c0_9] : memref<8x128xf32, #tpu.memory_space<vmem>>, vector<8x128xf32>
      tpu.vector_store %arg4[%c0_8, %c0_9], %13 {strides = array<i32>} : memref<8x128xf32, #tpu.memory_space<vmem>>, vector<8x128xf32>,
    } else {
    }
    %c0 = arith.constant 0 : index
    %c0_1 = arith.constant 0 : index
    %3 = vector.load %arg2[%c0, %c0_1] : memref<8x256xf32, #tpu.memory_space<vmem>>, vector<8x256xf32>
    %4 = vector.extract_strided_slice %3 {offsets = [0, 0], sizes = [8, 128], strides = [1, 1]} : vector<8x256xf32> to vector<8x128xf32>
    %5 = vector.extract_strided_slice %3 {offsets = [0, 128], sizes = [8, 128], strides = [1, 1]} : vector<8x256xf32> to vector<8x128xf32>
    %6 = arith.addf %4, %5 : vector<8x128xf32>
    %c0_2 = arith.constant 0 : index
    %c0_3 = arith.constant 0 : index
    %7 = vector.load %arg4[%c0_2, %c0_3] : memref<8x128xf32, #tpu.memory_space<vmem>>, vector<8x128xf32>
    %8 = arith.addf %7, %6 : vector<8x128xf32>
    %c0_4 = arith.constant 0 : index
    %c0_5 = arith.constant 0 : index
    %9 = vector.load %arg4[%c0_4, %c0_5] : memref<8x128xf32, #tpu.memory_space<vmem>>, vector<8x128xf32>
    tpu.vector_store %arg4[%c0_4, %c0_5], %8 {strides = array<i32>} : memref<8x128xf32, #tpu.memory_space<vmem>>, vector<8x128xf32>,
    %c0_i32_6 = arith.constant 0 : i32
    %10 = arith.cmpi eq, %arg1, %c0_i32_6 : i32
    %11 = arith.extui %10 : i1 to i32
    %c0_i32_7 = arith.constant 0 : i32
    %12 = arith.cmpi ne, %11, %c0_i32_7 : i32
    scf.if %12 {
      %c0_8 = arith.constant 0 : index
      %c0_9 = arith.constant 0 : index
      %13 = vector.load %arg4[%c0_8, %c0_9] : memref<8x128xf32, #tpu.memory_space<vmem>>, vector<8x128xf32>
      %cst = arith.constant dense<0.000000e+00> : vector<8xf32>
      %14 = vector.multi_reduction <add>, %13, %cst [1] : vector<8x128xf32> to vector<8xf32>
      %15 = vector.shape_cast %14 : vector<8xf32> to vector<8x1xf32>
      %cst_10 = arith.constant 3.906250e-03 : f32
      %16 = vector.broadcast %cst_10 : f32 to vector<8x1xf32>
      %17 = arith.mulf %15, %16 : vector<8x1xf32>
      %c0_11 = arith.constant 0 : index
      %c0_12 = arith.constant 0 : index
      %18 = vector.load %arg3[%c0_11, %c0_12] : memref<8x1xf32, #tpu.memory_space<vmem>>, vector<8x1xf32>
      tpu.vector_store %arg3[%c0_11, %c0_12], %17 {strides = array<i32>} : memref<8x1xf32, #tpu.memory_space<vmem>>, vector<8x1xf32>,
    } else {
    }
    return
  }
  func.func @transform_0(%arg0: i32, %arg1: i32) -> (i32, i32) {
    %c0_i32 = arith.constant 0 : i32
    return %arg0, %arg1 : i32, i32
  }
  func.func @transform_1(%arg0: i32, %arg1: i32) -> (i32, i32) {
    %c0_i32 = arith.constant 0 : i32
    %c0_i32_0 = arith.constant 0 : i32
    return %arg0, %c0_i32 : i32, i32
  }
}

</mosaic_0001>

<bundles_post_ra>
// kernel: tpu_custom_call.1
= control target key start
LH: loop header
LB: loop body
LE: loop exit
PB: predicated region body
PF: predicated region fallthrough
CT: control target
= control target key end

     0   :  { %6 = vsyncpa [#allocation4], 0  ;;  %s74_s9 = smov [#allocation3]   ;;  %s91_s0 = inlined_call_operand.hbm [shape: f32[8,256], index: 0, kind: input, shape index: {}]   ;;  %s92_s1 = inlined_call_operand.vmem [shape: f32[8,1], index: 1, kind: output, shape index: {}]  }
   0x1   :  { %s12_s8 = sshll.u32 %s91_s0, 4  ;;  %s14_s10 = sshll.u32 %s74_s9, 4  ;;  %s13_s8 = int_to_ptr.hbm [resolvable:$true] %s12_s8  ;;  %s15_s10 = int_to_ptr.vmem [resolvable:$true] %s14_s10 }
   0x2   :  { %17 = dma.hbm_to_vmem [thread:$0]  %s13_s8, 256, %s15_s10, [#allocation4]  }
   0x3   :  { %72 = dma.done.wait [#allocation4], 256  }
   0x4   :  { %73 = vsyncadd [#allocation4], 4294967040  ;;  %v27_v0 = vld [vmem:[#allocation3] sm:$0xff]  ;;  %v28_v1 = vld [vmem:[#allocation3 + $0x8] sm:$0xff]  ;;  %vm40_vm0 = vcmask 7168  }
   0x5   :  { %v29_v2 = vadd.f32 %v28_v1, %v27_v0 }
   0x7   :  { %37 = vadd.xlane.f32.xlu0 %v29_v2 }
  0x7a   :  { %v38_v3 = vpop.xlane.xlu0 %37 }
  0x7b   :  { %v39_v4 = vmul.f32 0.00390625, %v38_v3 }
  0x7d   :  { %41 = vst.msk [vmem:[%s92_s1] sm:$0xff] %vm40_vm0, %v39_v4 }
  0x7e   :  { %46 = vsyncpa [#allocation4], 1 }

</bundles_post_ra>
